<compile_context>
chip_gen: v7x
topology: tpu7x:2x2x1
jax: 0.10.0
libtpu: 0.0.40
codegen_flags: <defaults>
</compile_context>

<pallas_src>
import jax
import jax.numpy as jnp
from jax.experimental import pallas as pl
from jax.experimental.pallas import tpu as pltpu


# ---------------------------------------------------------------------------
# Main fused path: one (TB, C, F) slab per grid step.
# ---------------------------------------------------------------------------
def _se_kernel(x_ref, w1t_ref, w2t_ref, o_ref):
    # Pass 1: stream the slab for the f32-accumulated mean over F.
    # C already sits on the lane axis of the pooled (TB, C) result.
    y = jnp.mean(x_ref[...], axis=-1, dtype=jnp.float32)            # (TB, C)

    # Tiny FC stack on the MXU; weights arrive pre-transposed & pre-cast.
    h = jnp.dot(y.astype(w1t_ref.dtype), w1t_ref[...],
                preferred_element_type=jnp.float32)                  # (TB, H)
    h = jnp.maximum(h, 0.0)
    s = jnp.dot(h.astype(w2t_ref.dtype), w2t_ref[...],
                preferred_element_type=jnp.float32)                  # (TB, C)
    s = jax.nn.sigmoid(s)

    # Pass 2: second explicit streaming read of x_ref; lane-dense store.
    o_ref[...] = x_ref[...] * s.astype(o_ref.dtype)[:, :, None]


# ---------------------------------------------------------------------------
# Fallback path (one batch element > block budget): split F across an extra
# "arbitrary" grid axis. Kernel 1 computes the gate with an f32 partial-sum
# scratch; kernel 2 applies it in a second lane-dense sweep.
# ---------------------------------------------------------------------------
def _make_gate_kernel(f_total):
    inv_f = 1.0 / float(f_total)

    def gate_kernel(x_ref, w1t_ref, w2t_ref, s_ref, acc_ref):
        fi = pl.program_id(1)

        @pl.when(fi == 0)
        def _():
            acc_ref[...] = jnp.zeros_like(acc_ref)

        # Partial f32 sum over this F tile.
        acc_ref[...] += jnp.sum(x_ref[...], axis=-1, dtype=jnp.float32)   # (1, C)

        @pl.when(fi == pl.num_programs(1) - 1)
        def _():
            y = acc_ref[...] * inv_f                                       # (1, C)
            h = jnp.maximum(
                jnp.dot(y.astype(w1t_ref.dtype), w1t_ref[...],
                        preferred_element_type=jnp.float32), 0.0)
            s = jax.nn.sigmoid(
                jnp.dot(h.astype(w2t_ref.dtype), w2t_ref[...],
                        preferred_element_type=jnp.float32))               # (1, C)
            s_ref[...] = s[:, :, None]                                     # (1, C, 1)

    return gate_kernel


def _apply_gate_kernel(s_ref, x_ref, o_ref):
    # s_ref: (1, C, 1) f32 gate; x_ref / o_ref: (1, C, TF).
    o_ref[...] = x_ref[...] * s_ref[...].astype(o_ref.dtype)


# ---------------------------------------------------------------------------
# Tiling helpers.
# ---------------------------------------------------------------------------
def _pick_tb(B, per_batch_bytes, target_block_bytes):
    """Largest divisor of B whose (TB, C, F) block fits the byte budget,
    preferring an even number of grid steps >= 2 (v7x has 2 TensorCores).
    Returns None when a single batch element alone exceeds the budget."""
    divisors = [d for d in range(1, B + 1) if B % d == 0]
    fitting = [d for d in divisors if d * per_batch_bytes <= target_block_bytes]
    if not fitting:
        return None
    tb = max(fitting)
    # Prefer an even step count >= 2 so both v7x TCs (and their HBM paths) get
    # balanced work, as long as blocks stay >= ~512 KiB (or half the whole
    # tensor for small inputs, where any split is cheap).
    floor = min(512 << 10, (B * per_batch_bytes) // 2)
    even = [d for d in fitting
            if (B // d) >= 2 and (B // d) % 2 == 0
            and d * per_batch_bytes >= floor]
    if even and ((B // tb) < 2 or (B // tb) % 2 != 0):
        tb = max(even)
    return tb


def _pick_tf(C, F, itemsize, target_block_bytes):
    """Largest multiple-of-128 divisor of F whose (1, C, TF) block fits."""
    cands = [d for d in range(128, F + 1, 128) if F % d == 0]
    if not cands:
        cands = [F]  # F not 128-divisible; keep whole (see TODO below)
    fitting = [d for d in cands if C * d * itemsize <= target_block_bytes]
    return max(fitting) if fitting else min(cands)


# ---------------------------------------------------------------------------
# Wrapper.
# ---------------------------------------------------------------------------
def frequency_aware_attention(x, w1, w2, *, target_block_bytes=4 << 20):
    """x: (B, C, F); w1: (H, C) (PyTorch Linear weight); w2: (C, H)."""
    B, C, F = x.shape
    H = w1.shape[0]
    itemsize = jnp.dtype(x.dtype).itemsize

    # PyTorch Linear computes y @ W.T; pre-transpose AND pre-cast once in the
    # wrapper (zero-cost glue) so no per-grid-step casts run inside the kernel.
    wdtype = x.dtype if jnp.dtype(x.dtype) == jnp.dtype(jnp.bfloat16) else jnp.float32
    w1t = jnp.asarray(w1, dtype=wdtype).T          # (C, H)
    w2t = jnp.asarray(w2, dtype=wdtype).T          # (H, C)
    weight_bytes = 2 * C * H * jnp.dtype(wdtype).itemsize

    per_batch_bytes = C * F * itemsize
    tb = _pick_tb(B, per_batch_bytes, target_block_bytes)

    if tb is not None:
        block_bytes = tb * per_batch_bytes
        vmem_limit = int(min(max(4 * block_bytes + 4 * weight_bytes + (4 << 20),
                                 32 << 20), 48 << 20))
        return pl.pallas_call(
            _se_kernel,
            out_shape=jax.ShapeDtypeStruct((B, C, F), x.dtype),
            grid_spec=pltpu.PrefetchScalarGridSpec(
                num_scalar_prefetch=0,
                grid=(B // tb,),
                in_specs=[
                    pl.BlockSpec((tb, C, F), lambda b: (b, 0, 0)),
                    pl.BlockSpec((C, H), lambda b: (0, 0)),   # grid-invariant
                    pl.BlockSpec((H, C), lambda b: (0, 0)),   # grid-invariant
                ],
                out_specs=pl.BlockSpec((tb, C, F), lambda b: (b, 0, 0)),
            ),
            compiler_params=pltpu.CompilerParams(
                dimension_semantics=("parallel",),
                vmem_limit_bytes=vmem_limit,
            ),
            cost_estimate=pl.CostEstimate(
                flops=2 * B * C * F + 4 * B * C * H,
                transcendentals=B * C,
                bytes_accessed=2 * B * C * F * itemsize + 2 * weight_bytes,
            ),
        )(x, w1t, w2t)

    # ---- Fallback: one batch element does not fit the block budget ----
    # TODO(synk): pad F to a multiple of 128 in the wrapper when the real bin
    # count is not 128-aligned (keeps the store path lane-dense).
    tf = _pick_tf(C, F, itemsize, target_block_bytes)
    nf = F // tf
    block_bytes = C * tf * itemsize
    vmem_limit = int(min(max(4 * block_bytes + 4 * weight_bytes + (4 << 20),
                             32 << 20), 48 << 20))

    gate = pl.pallas_call(
        _make_gate_kernel(F),
        out_shape=jax.ShapeDtypeStruct((B, C, 1), jnp.float32),
        grid_spec=pltpu.PrefetchScalarGridSpec(
            num_scalar_prefetch=0,
            grid=(B, nf),
            in_specs=[
                pl.BlockSpec((1, C, tf), lambda b, f: (b, 0, f)),
                pl.BlockSpec((C, H), lambda b, f: (0, 0)),
                pl.BlockSpec((H, C), lambda b, f: (0, 0)),
            ],
            out_specs=pl.BlockSpec((1, C, 1), lambda b, f: (b, 0, 0)),
            scratch_shapes=[pltpu.VMEM((1, C), jnp.float32)],
        ),
        compiler_params=pltpu.CompilerParams(
            dimension_semantics=("parallel", "arbitrary"),
            vmem_limit_bytes=vmem_limit,
        ),
        cost_estimate=pl.CostEstimate(
            flops=B * C * F + 4 * B * C * H,
            transcendentals=B * C,
            bytes_accessed=B * C * F * itemsize + 2 * weight_bytes,
        ),
    )(x, w1t, w2t)

    return pl.pallas_call(
        _apply_gate_kernel,
        out_shape=jax.ShapeDtypeStruct((B, C, F), x.dtype),
        grid_spec=pltpu.PrefetchScalarGridSpec(
            num_scalar_prefetch=0,
            grid=(B, nf),
            in_specs=[
                pl.BlockSpec((1, C, 1), lambda b, f: (b, 0, 0)),
                pl.BlockSpec((1, C, tf), lambda b, f: (b, 0, f)),
            ],
            out_specs=pl.BlockSpec((1, C, tf), lambda b, f: (b, 0, f)),
        ),
        compiler_params=pltpu.CompilerParams(
            dimension_semantics=("parallel", "parallel"),
            vmem_limit_bytes=vmem_limit,
        ),
        cost_estimate=pl.CostEstimate(
            flops=B * C * F,
            transcendentals=0,
            bytes_accessed=2 * B * C * F * itemsize,
        ),
    )(gate, x)


def _reference(x, w1, w2):
    y = jnp.mean(x, axis=-1)                              # (B, C)
    h = jnp.maximum(y @ w1.T, 0.0)                        # (B, H)
    s = jax.nn.sigmoid(h @ w2.T)                          # (B, C)
    return x * s[:, :, None]


if __name__ == "__main__":
    B, C, F = 8, 32, 128
    reduction = 8
    H = max(C // reduction, 8)

    key = jax.random.PRNGKey(0)
    kx, k1, k2 = jax.random.split(key, 3)
    x = jax.random.normal(kx, (B, C, F), dtype=jnp.float32)
    # Deterministic synthetic weights (shapes match nn.Linear: (out, in)).
    w1 = jax.random.normal(k1, (H, C), dtype=jnp.float32) * 0.1
    w2 = jax.random.normal(k2, (C, H), dtype=jnp.float32) * 0.1

    # Main fused path (one (TB, C, F) slab per grid step, 2 grid steps here).
    out = jax.block_until_ready(frequency_aware_attention(x, w1, w2))
    ref = _reference(x, w1, w2)
    assert out.shape == (B, C, F)
    assert jnp.allclose(out, ref, atol=1e-5, rtol=1e-5)

    # F-split fallback path (forced by a tiny block budget so the per-batch
    # slab "does not fit"; exercises the partial-sum reduction with nf=2).
    B2, F2 = 2, 512
    x2 = jax.random.normal(kx, (B2, C, F2), dtype=jnp.float32)
    out2 = jax.block_until_ready(
        frequency_aware_attention(x2, w1, w2, target_block_bytes=32 << 10))
    ref2 = _reference(x2, w1, w2)
    assert out2.shape == (B2, C, F2)
    assert jnp.allclose(out2, ref2, atol=1e-5, rtol=1e-5)

    print("KERNEL_OK")
</pallas_src>

<mosaic_0001>
module attributes {stable_mosaic.version = 11 : i64} {
  func.func @_se_kernel(%arg0: i32, %arg1: memref<4x32x128xf32, #tpu.memory_space<vmem>>, %arg2: memref<32x8xf32, #tpu.memory_space<vmem>>, %arg3: memref<8x32xf32, #tpu.memory_space<vmem>>, %arg4: memref<4x32x128xf32, #tpu.memory_space<vmem>>) attributes {dimension_semantics = [#tpu.dimension_semantics<parallel>], iteration_bounds = array<i64: 2>, scalar_prefetch = 0 : i64, scratch_operands = 0 : i64, tpu.core_type = #tpu.core_type<tc>, window_params = [{transform_indices = @transform_0, window_bounds = array<i64: 4, 32, 128>}, {pipeline_mode = #tpu.pipeline_mode<synchronous>, transform_indices = @transform_1, window_bounds = array<i64: 32, 8>}, {pipeline_mode = #tpu.pipeline_mode<synchronous>, transform_indices = @transform_2, window_bounds = array<i64: 8, 32>}, {transform_indices = @transform_3, window_bounds = array<i64: 4, 32, 128>}]} {
    %c0 = arith.constant 0 : index
    %c0_0 = arith.constant 0 : index
    %c0_1 = arith.constant 0 : index
    %0 = vector.load %arg1[%c0, %c0_0, %c0_1] : memref<4x32x128xf32, #tpu.memory_space<vmem>>, vector<4x32x128xf32>
    %cst = arith.constant dense<0.000000e+00> : vector<4x32xf32>
    %1 = vector.multi_reduction <add>, %0, %cst [2] : vector<4x32x128xf32> to vector<4x32xf32>
    %cst_2 = arith.constant 1.280000e+02 : f32
    %2 = vector.broadcast %cst_2 : f32 to vector<4x32xf32>
    %3 = arith.divf %1, %2 : vector<4x32xf32>
    %c0_3 = arith.constant 0 : index
    %c0_4 = arith.constant 0 : index
    %4 = vector.load %arg2[%c0_3, %c0_4] : memref<32x8xf32, #tpu.memory_space<vmem>>, vector<32x8xf32>
    %cst_5 = arith.constant dense<0.000000e+00> : vector<4x8xf32>
    %5 = tpu.matmul %3, %4, %cst_5 {dimension_numbers = #tpu.dot_dimension_numbers<[1], [0], [0], [1], [0, 0, 1, 1], [], []>} : vector<4x32xf32>, vector<32x8xf32>, vector<4x8xf32> -> vector<4x8xf32>
    %cst_6 = arith.constant 0.000000e+00 : f32
    %6 = vector.broadcast %cst_6 : f32 to vector<4x8xf32>
    %7 = arith.maximumf %5, %6 : vector<4x8xf32>
    %c0_7 = arith.constant 0 : index
    %c0_8 = arith.constant 0 : index
    %8 = vector.load %arg3[%c0_7, %c0_8] : memref<8x32xf32, #tpu.memory_space<vmem>>, vector<8x32xf32>
    %cst_9 = arith.constant dense<0.000000e+00> : vector<4x32xf32>
    %9 = tpu.matmul %7, %8, %cst_9 {dimension_numbers = #tpu.dot_dimension_numbers<[1], [0], [0], [1], [0, 0, 1, 1], [], []>} : vector<4x8xf32>, vector<8x32xf32>, vector<4x32xf32> -> vector<4x32xf32>
    %10 = arith.negf %9 : vector<4x32xf32>
    %11 = math.exp %10 : vector<4x32xf32>
    %cst_10 = arith.constant 1.000000e+00 : f32
    %12 = vector.broadcast %cst_10 : f32 to vector<4x32xf32>
    %13 = arith.addf %12, %11 : vector<4x32xf32>
    %14 = arith.divf %12, %13 : vector<4x32xf32>
    %c0_11 = arith.constant 0 : index
    %c0_12 = arith.constant 0 : index
    %c0_13 = arith.constant 0 : index
    %15 = vector.load %arg1[%c0_11, %c0_12, %c0_13] : memref<4x32x128xf32, #tpu.memory_space<vmem>>, vector<4x32x128xf32>
    %16 = vector.shape_cast %14 : vector<4x32xf32> to vector<4x32x1xf32>
    %17 = vector.broadcast %16 : vector<4x32x1xf32> to vector<4x32x128xf32>
    %18 = arith.mulf %15, %17 : vector<4x32x128xf32>
    %c0_14 = arith.constant 0 : index
    %c0_15 = arith.constant 0 : index
    %c0_16 = arith.constant 0 : index
    %19 = vector.load %arg4[%c0_14, %c0_15, %c0_16] : memref<4x32x128xf32, #tpu.memory_space<vmem>>, vector<4x32x128xf32>
    tpu.vector_store %arg4[%c0_14, %c0_15, %c0_16], %18 {strides = array<i32>} : memref<4x32x128xf32, #tpu.memory_space<vmem>>, vector<4x32x128xf32>,
    return
  }
  func.func @transform_0(%arg0: i32) -> (i32, i32, i32) {
    %c0_i32 = arith.constant 0 : i32
    %c0_i32_0 = arith.constant 0 : i32
    %c0_i32_1 = arith.constant 0 : i32
    return %arg0, %c0_i32, %c0_i32_0 : i32, i32, i32
  }
  func.func @transform_1(%arg0: i32) -> (i32, i32) {
    %c0_i32 = arith.constant 0 : i32
    %c0_i32_0 = arith.constant 0 : i32
    %c0_i32_1 = arith.constant 0 : i32
    return %c0_i32, %c0_i32_0 : i32, i32
  }
  func.func @transform_2(%arg0: i32) -> (i32, i32) {
    %c0_i32 = arith.constant 0 : i32
    %c0_i32_0 = arith.constant 0 : i32
    %c0_i32_1 = arith.constant 0 : i32
    return %c0_i32, %c0_i32_0 : i32, i32
  }
  func.func @transform_3(%arg0: i32) -> (i32, i32, i32) {
    %c0_i32 = arith.constant 0 : i32
    %c0_i32_0 = arith.constant 0 : i32
    %c0_i32_1 = arith.constant 0 : i32
    return %arg0, %c0_i32, %c0_i32_0 : i32, i32, i32
  }
}

</mosaic_0001>

<bundles_post_ra>
// kernel: tpu_custom_call.1
= control target key start
LH: loop header
LB: loop body
LE: loop exit
PB: predicated region body
PF: predicated region fallthrough
CT: control target
= control target key end

     0   :  { %8 = vsyncpa [#allocation3], 0  ;;  %s1259_s0 = inlined_call_operand.hbm [shape: f32[8,32,128], index: 0, kind: input, shape index: {}]   ;;  %s1260_s1 = inlined_call_operand.vmem [shape: f32[32,8], index: 1, kind: input, shape index: {}]   ;;  %s1261_s2 = inlined_call_operand.vmem [shape: f32[8,32], index: 2, kind: input, shape index: {}]   ;;  %s1262_s3 = inlined_call_operand.hbm [shape: f32[8,32,128], index: 3, kind: output, shape index: {}]  }
   0x1   :  { %10 = vsyncpa [#allocation3 + $0x1], 0 }
   0x2   :  { %11 = vsyncpa [#allocation4], 0 }
   0x3   :  { %13 = vsyncpa [#allocation4 + $0x1], 0  ;;  %s954_s12 = smov 0   ;;  %s956_s13 = smov 0  }
   0x4   :  { %s958_s14 = smov 0   ;;  %s960_s15 = smov 0  }
   0x5 LB: > { %s975_s16 = sadd.s32 4294967295, %s923_s15   ;;  %s718_s17 = sadd.s32 4294967294, %s923_s15   ;;  %s923_s15 = sphi %s960_s15, %s1275_s15   ;;  %s919_s14 = sphi %s958_s14, %s1274_s14   ;;  %s915_s13 = sphi %s956_s13, %s1273_s13   ;;  %s911_s12 = sphi %s954_s12, %s1272_s12  }
   0x6   : > { %s979_s18 = sadd.s32 1, %s923_s15   ;;  %s26_s19 = sadd.s32 1, %s919_s14 }
   0x7   : > { %s23_s20 = ssub.s32 %s923_s15, %s979_s18  ;;  %p33_p0 = scmp.ne.s32.totalorder %s919_s14, %s915_s13 }
   0x8   : > { %p24_p1 = scmp.eq.s32.totalorder %s23_s20, 0  ;;  %p34_p2 = scmp.eq.s32.totalorder %s923_s15, 0 }
   0x9   : > { %p39_p3 = scmp.ne.s32.totalorder %s915_s13, %s911_s12  ;;  %p40_p4 = scmp.eq.s32.totalorder %s975_s16, 0 }
   0xa   : > { %s991_s21 = scalar_select %p24_p1, %s919_s14, %s26_s19  }
   0xb   : > { %p993_p5 = por %p34_p2, %p33_p0  ;;  %p997_p6 = por %p40_p4, %p39_p3 }
   0xc   : > { %p105_p7 = scmp.eq.s32.totalorder %s975_s16, 1  ;;  %p111_p8 = scmp.eq.s32.totalorder %s718_s17, 1 }
   0xd   : > { %p782_p10 = scmp.lt.s32.totalorder %s923_s15, 2  ;;  %s137_s26 = sand.u32 1, %s919_s14  }
   0xe   : > { %p1004_p11 = por %p105_p7, %p33_p0  ;;  %p1008_p12 = por %p111_p8, %p39_p3 }
   0xf   : > { %s738_s27 = sshll.u32 %s923_s15, 11  ;;  %s721_s28 = sshll.u32 %s137_s26, 7 }
  0x10   : > { %s1266_s24 = scalar_select %p1004_p11, 1, 0 }
  0x11   : > { %s1267_s25 = scalar_select %p1008_p12, 1, 0 }
  0x12   : > { %s1017_s4 = scalar_lea.hbm %s1259_s0, %s738_s27  ;;  %s141_s5 = scalar_lea.vmem [#allocation2], %s721_s28 }
  0x13   : > { %s149_s6 = sshll.u32 %s141_s5, 4  ;;  %p1021_p13 = pnand %p782_p10, %p993_p5  ;;  %s1025_s6 = int_to_ptr.vmem [resolvable:$true] %s149_s6 }
  0x14   : > { %s1027_s8 = scalar_lea.sflag [#allocation3], %s137_s26  ;;  %s827_s9 = scalar_lea.hbm %s1017_s4, 2048 }
  0x15   : > { %p828_p0 = scmp.ne.s32.totalorder %s1017_s4, %s827_s9  ;;  %p829_p1 = pneg %p1021_p13 }
  0x16   : > { %s832_s17 = scalar_lea.hbm %s1259_s0, 4096  ;;  %p833_p4 = scmp.lt.u32.totalorder %s1017_s4, %s1259_s0 }
  0x17   : > { %p830_p2 = pnand %p829_p1, %p828_p0  ;;  %p834_p5 = scmp.lt.u32.totalorder %s832_s17, %s827_s9 }
  0x18   : > { %p836_p8 = scmp.lt.u32.totalorder %s827_s9, %s1017_s4 }
  0x19   : > { %p831_p3 = pneg %p830_p2  ;;  %p835_p7 = por %p834_p5, %p833_p4 }
  0x1b   : > { %p837_p10 = por %p836_p8, %p835_p7 }
  0x1d   : > { %p838_p9 = pnand %p837_p10, %p831_p3 }
  0x1f   : > { %841 = shalt.err (!%p838_p9)
}
  0x20   : > { %s842_s22 = scalar_lea.vmem %s1025_s6, 2048  ;;  %s925_s26 = smov [#allocation2]  }
  0x21   : > { %p843_p0 = scmp.ne.s32.totalorder %s1025_s6, %s842_s22  ;;  %s847_s27 = sshll.u32 %s925_s26, 4  ;;  %s848_s27 = int_to_ptr.vmem [resolvable:$false] %s847_s27 }
  0x22   : > { %s849_s28 = scalar_lea.vmem %s848_s27, 4096  ;;  %p850_p11 = scmp.lt.s32.totalorder %s1025_s6, %s848_s27 }
  0x23   : > { %p845_p2 = pnand %p843_p0, %p829_p1  ;;  %p851_p4 = scmp.lt.s32.totalorder %s849_s28, %s842_s22 }
  0x25   : > { %p846_p12 = pneg %p845_p2  ;;  %p852_p5 = por %p851_p4, %p850_p11 }
  0x27   : > { %p853_p7 = pnand %p852_p5, %p846_p12 }
  0x29   : > { %856 = shalt.err (!%p853_p7)
}
  0x2a   : > { %s926_s29 = smov 128   ;;  %s927_s30 = smov 8  }
  0x2b   : > { %777 = dma.hbm_to_vmem [thread:$0]  (!%p1021_p13), %s1017_s4, 2048, %s1025_s6, %s1027_s8, %s926_s29, %s926_s29, %s927_s30  }
  0x2c   : > { %p725_p9 = scmp.ge.s32.totalorder %s923_s15, 1  ;;  %p157_p1 = scmp.lt.s32.totalorder %s923_s15, 3 }
  0x2e   : > { %p158_p3 = pnand %p725_p9, %p157_p1 }
  0x2f   : > { %s1058_s5 = sand.u32 (!%p158_p3), 1, %s915_s13  }
  0x30   : > { %161 = sbr.rel (%p158_p3) target bundleno = 853 (0x355), region = 32  ;;  %s726_s9 = sshll.u32 (!%p158_p3), %s1058_s5, 7 }
  0x31   : > { %s164_s10 = scalar_lea.sflag (!%p158_p3), [#allocation3], %s1058_s5  ;;  %s1064_s11 = scalar_lea.vmem (!%p158_p3), [#allocation2], %s726_s9 }
  0x37   : > { %902 = dma.done.wait (%p997_p6), %s164_s10, 2048  }
  0x38   : > { %904 = vsyncadd (%p997_p6), %s164_s10, 4294965248  ;;  %v1071_v0 = vld [vmem:[%s1064_s11 + $0x20] sm:$0xff]  ;;  %v1079_v2 = vld [vmem:[%s1064_s11 + $0x28] sm:$0xff]  ;;  %v928_v19 = vmov 0.0|0.0   ;;  %vm929_vm0 = vmmov 0   ;;  %v930_v23 = vmov 0.0   ;;  %v277_v30 = vlaneseq }
  0x39   : > { %v1074_v1 = vld [vmem:[%s1064_s11] sm:$0xff]  ;;  %216 = vadd.xlane.f32.xlu1 %v1071_v0  ;;  %v1082_v3 = vld [vmem:[%s1064_s11 + $0x8] sm:$0xff]  ;;  %v1087_v4 = vld [vmem:[%s1064_s11 + $0x30] sm:$0xff]  ;;  %764 = vmatprep.subr.bf16.mxu0 %v928_v19  ;;  %vm288_vm1 = vcmask 130112   ;;  %vm295_vm2 = vcmask 195712   ;;  %vm302_vm3 = vcmask 261312  }
  0x3a   : > { %208 = vadd.xlane.f32.xlu0 %v1074_v1  ;;  %v1090_v5 = vld [vmem:[%s1064_s11 + $0x10] sm:$0xff]  ;;  %v1095_v6 = vld [vmem:[%s1064_s11 + $0x48] sm:$0xff]  ;;  %v1098_v7 = vld [vmem:[%s1064_s11 + $0x40] sm:$0xff]  ;;  %756 = vmatprep.mubr.msk.f32.mxu0 %vm929_vm0, %v930_v23  ;;  %v278_v33 = vand.u32 127, %v277_v30  ;;  %v1146_v34 = vshrl.u32 %v277_v30, 7  ;;  %vm361_vm4 = vcmask 1041409  }
  0x3b   : > { %v1103_v8 = vld [vmem:[%s1064_s11 + $0x38] sm:$0xff]  ;;  %v1111_v10 = vld [vmem:[%s1064_s11 + $0x60] sm:$0xff]  ;;  %v1114_v11 = vld [vmem:[%s1064_s11 + $0x50] sm:$0xff]  ;;  %759 = vmatprep.subr.mxu1 %v930_v23  ;;  %761 = vmatprep.mubr.msk.f32.mxu1 %vm929_vm0, %v930_v23  ;;  %vm363_vm5 = vcmask 1042434   ;;  %vm365_vm6 = vcmask 1043459   ;;  %vm367_vm7 = vcmask 261120  }
  0x3c   : > { %v1106_v9 = vld [vmem:[%s1064_s11 + $0x18] sm:$0xff]  ;;  %v1122_v13 = vld [vmem:[%s1064_s11 + $0x68] sm:$0xff]  ;;  %v1127_v14 = vld [vmem:[%s1064_s11 + $0x70] sm:$0xff]  ;;  %v283_v35 = vadd.s32 4294967288, %v278_v33  ;;  %v290_v36 = vadd.s32 4294967280, %v278_v33  ;;  %v281_v39 = vsub.s32 %v278_v33, %v1146_v34  ;;  %v297_v40 = vadd.s32 4294967272, %v278_v33 }
  0x3d   : > { %218 = vadd.xlane.f32.xlu1 %v1079_v2  ;;  %v1119_v12 = vld [vmem:[%s1064_s11 + $0x58] sm:$0xff]  ;;  %v257_v16 = vld [vmem:[%s1260_s1] sm:$0xff]  ;;  %v258_v17 = vld [vmem:[%s1260_s1 + $0x8] sm:$0xff]  ;;  %vm442_vm8 = vcmask 64512   ;;  %s1176_s27 = scalar_lea.vmem [#allocation5], %s726_s9  ;;  %s740_s28 = sshll.u32 %s975_s16, 11 }
  0x3e   : > { %210 = vadd.xlane.f32.xlu0 %v1082_v3  ;;  %v1130_v15 = vld [vmem:[%s1064_s11 + $0x78] sm:$0xff]  ;;  %v765_v18 = vpack.c.bf16 %v258_v17, %v257_v16  ;;  %v259_v20 = vld [vmem:[%s1260_s1 + $0x10] sm:$0xff]  ;;  %v286_v42 = vsub.s32 %v283_v35, %v1146_v34  ;;  %v293_v44 = vsub.s32 %v290_v36, %v1146_v34  ;;  %v300_v53 = vsub.s32 %v297_v40, %v1146_v34  ;;  %s645_s29 = sshll.u32 %s1176_s27, 4  ;;  %s1211_s10 = scalar_lea.hbm %s1262_s3, %s740_s28  ;;  %s1213_s29 = int_to_ptr.vmem [resolvable:$true] %s645_s29 }
  0x3f   : > { %v260_v21 = vld [vmem:[%s1260_s1 + $0x18] sm:$0xff]  ;;  %s631_s11 = scalar_lea.sflag [#allocation4], %s1058_s5  ;;  %s857_s23 = scalar_lea.vmem %s1213_s29, 2048 }
  0x40   : > { %766 = vmatpush3.bf16.msra.mxu0 %v765_v18  ;;  %v768_v22 = vpack.c.bf16 %v260_v21, %v259_v20  ;;  %p858_p6 = scmp.ne.s32.totalorder %s1213_s29, %s857_s23  ;;  %p1269_p11 = scmp.ne.s32.totalorder %s1266_s24, 0 }
  0x41   : > { %220 = vadd.xlane.f32.xlu1 %v1087_v4  ;;  %767 = vmatprep.subr.bf16.mxu0 %v928_v19  ;;  %s931_s16 = smov [#allocation5]  }
  0x42   : > { %212 = vadd.xlane.f32.xlu0 %v1090_v5  ;;  %p859_p12 = pnand %p858_p6, %p1269_p11  ;;  %s861_s4 = sshll.u32 %s931_s16, 4  ;;  %s862_s4 = int_to_ptr.vmem [resolvable:$false] %s861_s4 }
  0x43   : > { %s863_s6 = scalar_lea.vmem %s862_s4, 4096  ;;  %p864_p8 = scmp.lt.s32.totalorder %s1213_s29, %s862_s4 }
  0x44   : > { %769 = vmatpush3.bf16.msra.mxu0 %v768_v22  ;;  %p860_p13 = pneg %p859_p12  ;;  %p865_p10 = scmp.lt.s32.totalorder %s863_s6, %s857_s23 }
  0x45   : > { %226 = vadd.xlane.f32.xlu1 %v1095_v6 }
  0x46   : > { %224 = vadd.xlane.f32.xlu0 %v1098_v7  ;;  %p866_p0 = por %p865_p10, %p864_p8 }
  0x48   : > { %p867_p2 = pnand %p866_p0, %p860_p13 }
  0x49   : > { %222 = vadd.xlane.f32.xlu1 %v1103_v8 }
  0x4a   : > { %214 = vadd.xlane.f32.xlu0 %v1106_v9 }
  0x4d   : > { %232 = vadd.xlane.f32.xlu1 %v1111_v10 }
  0x4e   : > { %228 = vadd.xlane.f32.xlu0 %v1114_v11 }
  0x51   : > { %230 = vadd.xlane.f32.xlu1 %v1119_v12 }
  0x52   : > { %234 = vadd.xlane.f32.xlu0 %v1122_v13 }
  0x55   : > { %238 = vadd.xlane.f32.xlu1 %v1130_v15 }
  0x56   : > { %236 = vadd.xlane.f32.xlu0 %v1127_v14 }
  0xc6   : > { %v217_v24 = vpop.xlane.xlu1 %216 }
  0xc7   : > { %v209_v25 = vpop.xlane.xlu0 %208  ;;  %v245_v41 = vmul.f32 0.0078125, %v217_v24 }
  0xc8   : > { %v241_v45 = vmul.f32 0.0078125, %v209_v25 }
  0xc9   : > { %v307_v57 = vrot.slane %v245_v41, %v281_v39 }
  0xca   : > { %v219_v26 = vpop.xlane.xlu1 %218  ;;  %v282_v59 = vrot.slane %v241_v45, %v281_v39 }
  0xcb   : > { %v211_v27 = vpop.xlane.xlu0 %210  ;;  %v246_v43 = vmul.f32 0.0078125, %v219_v26 }
  0xcc   : > { %v242_v46 = vmul.f32 0.0078125, %v211_v27 }
  0xcd   : > { %v311_v58 = vrot.slane %v246_v43, %v286_v42 }
  0xce   : > { %v221_v28 = vpop.xlane.xlu1 %220  ;;  %v287_v60 = vrot.slane %v242_v46, %v286_v42 }
  0xcf   : > { %v213_v29 = vpop.xlane.xlu0 %212  ;;  %v247_v47 = vmul.f32 0.0078125, %v221_v28  ;;  %v312_v25 = vsel %vm288_vm1, %v311_v58, %v307_v57 }
  0xd0   : > { %v243_v48 = vmul.f32 0.0078125, %v213_v29  ;;  %v289_v27 = vsel %vm288_vm1, %v287_v60, %v282_v59  ;;  %v524_v59 = vsub.s32 0, %v1146_v34 }
  0xd1   : > { %v316_v61 = vrot.slane %v247_v47, %v293_v44 }
  0xd2   : > { %v227_v31 = vpop.xlane.xlu1 %226  ;;  %v294_v62 = vrot.slane %v243_v48, %v293_v44 }
  0xd3   : > { %v225_v32 = vpop.xlane.xlu0 %224  ;;  %v250_v51 = vmul.f32 0.0078125, %v227_v31  ;;  %v317_v28 = vsel %vm295_vm2, %v316_v61, %v312_v25 }
  0xd4   : > { %v249_v52 = vmul.f32 0.0078125, %v225_v32  ;;  %v296_v32 = vsel %vm295_vm2, %v294_v62, %v289_v27  ;;  %v543_v62 = vsub.s32 1, %v1146_v34 }
  0xd5   : > { %v330_v17 = vrot.slane %v250_v51, %v286_v42 }
  0xd6   : > { %v223_v37 = vpop.xlane.xlu1 %222  ;;  %v326_v18 = vrot.slane %v249_v52, %v281_v39 }
  0xd7   : > { %v215_v38 = vpop.xlane.xlu0 %214  ;;  %v248_v54 = vmul.f32 0.0078125, %v223_v37 }
  0xd8   : > { %v244_v55 = vmul.f32 0.0078125, %v215_v38  ;;  %v331_v33 = vsel %vm288_vm1, %v330_v17, %v326_v18  ;;  %v581_v18 = vsub.s32 3, %v1146_v34 }
  0xd9   : > { %v321_v21 = vrot.slane %v248_v54, %v300_v53 }
  0xda   : > { %v233_v49 = vpop.xlane.xlu1 %232  ;;  %v301_v22 = vrot.slane %v244_v55, %v300_v53 }
  0xdb   : > { %v229_v50 = vpop.xlane.xlu0 %228  ;;  %v253_v23 = vmul.f32 0.0078125, %v233_v49  ;;  %v322_v37 = vsel %vm302_vm3, %v321_v21, %v317_v28 }
  0xdc   : > { %v251_v56 = vmul.f32 0.0078125, %v229_v50  ;;  %v303_v38 = vsel %vm302_vm3, %v301_v22, %v296_v32 }
  0xdd   : > { %v345_v40 = vrot.slane %v253_v23, %v281_v39  ;;  %v362_v48 = vsel %vm361_vm4, %v322_v37, %v303_v38  ;;  %v441_v39 = vld [vmem:[%s1261_s2] sm:$0xff] }
  0xde   : > { %v231_v63 = vpop.xlane.xlu1 %230  ;;  %v335_v24 = vrot.slane %v251_v56, %v293_v44  ;;  %760 = vmatpush3.msra.mxu1 %v441_v39 }
  0xdf   : > { %v235_v16 = vpop.xlane.xlu0 %234  ;;  %v252_v19 = vmul.f32 0.0078125, %v231_v63 }
  0xe0   : > { %v254_v20 = vmul.f32 0.0078125, %v235_v16  ;;  %v336_v41 = vsel %vm295_vm2, %v335_v24, %v331_v33  ;;  %v562_v16 = vsub.s32 2, %v1146_v34 }
  0xe1   : > { %v340_v26 = vrot.slane %v252_v19, %v300_v53 }
  0xe2   : > { %v349_v29 = vrot.slane %v254_v20, %v286_v42  ;;  %v239_v31 = vpop.xlane.xlu1 %238 }
  0xe3   : > { %v237_v30 = vpop.xlane.xlu0 %236  ;;  %v256_v36 = vmul.f32 0.0078125, %v239_v31  ;;  %v341_v43 = vsel %vm302_vm3, %v340_v26, %v336_v41 }
  0xe4   : > { %v255_v35 = vmul.f32 0.0078125, %v237_v30  ;;  %v350_v46 = vsel %vm288_vm1, %v349_v29, %v345_v40  ;;  %v364_v50 = vsel %vm363_vm5, %v341_v43, %v362_v48 }
  0xe5   : > { %v359_v42 = vrot.slane %v256_v36, %v300_v53 }
  0xe6   : > { %v354_v45 = vrot.slane %v255_v35, %v293_v44 }
  0xe8   : > { %v355_v47 = vsel %vm295_vm2, %v354_v45, %v350_v46 }
  0xe9   : > { %v360_v49 = vsel %vm302_vm3, %v359_v42, %v355_v47 }
  0xea   : > { %v366_v51 = vsel %vm365_vm6, %v360_v49, %v364_v50 }
  0xeb   : > { %757 = vmatmul.mubr.msk.f32.vlgmr.msra.gmra.mrb[0].mxu0 %vm367_vm7, %v366_v51 }
 0x1be   : > { %v436_v44 = vpop.f32.mrb[0].mxu0 }
 0x1bf   : > { %v440_v52 = vmax.f32 %v436_v44, 0.0  ;;  %v758_v53 = vpop.f32.mrb[1].mxu0 }
 0x1c1   : > { %762 = vmatmul.mubr.msk.f32.vlgmr.msra.gmra.mrb[0].mxu1 %vm442_vm8, %v440_v52 }
 0x294   : > { %v512_v54 = vpop.f32.mrb[0].mxu1 }
 0x295   : > { %v730_v55 = vmul.f32 -1.442695, %v512_v54  ;;  %v763_v56 = vpop.f32.mrb[1].mxu1 }
 0x297   : > { %823 = vpow2.f32 %v730_v55 }
 0x2a1   : > { %v824_v57 = vpop.eup %823 }
 0x2a2   : > { %v519_v58 = vadd.f32 1.0, %v824_v57 }
 0x2a4   : > { %825 = vrcp.f32 %v519_v58 }
 0x2ae   : > { %v826_v60 = vpop.eup %825 }
 0x2af   : > { %v525_v61 = vrot.slane %v826_v60, %v524_v59  ;;  %v544_v63 = vrot.slane %v826_v60, %v543_v62  ;;  %v563_v17 = vrot.slane %v826_v60, %v562_v16  ;;  %v582_v19 = vrot.slane %v826_v60, %v581_v18 }
 0x2b1   : > { %531 = vbcast.lane.b32.xlu1 %v525_v61, 264  ;;  %527 = vbcast.lane.b32.xlu0 %v525_v61, 256 }
 0x2b5   : > { %535 = vbcast.lane.b32.xlu1 %v525_v61, 272  ;;  %546 = vbcast.lane.b32.xlu0 %v544_v63, 256 }
 0x2b9   : > { %539 = vbcast.lane.b32.xlu1 %v525_v61, 280  ;;  %554 = vbcast.lane.b32.xlu0 %v544_v63, 272 }
 0x2bd   : > { %550 = vbcast.lane.b32.xlu1 %v544_v63, 264  ;;  %565 = vbcast.lane.b32.xlu0 %v563_v17, 256 }
 0x2c1   : > { %558 = vbcast.lane.b32.xlu1 %v544_v63, 280  ;;  %573 = vbcast.lane.b32.xlu0 %v563_v17, 272 }
 0x2c5   : > { %569 = vbcast.lane.b32.xlu1 %v563_v17, 264  ;;  %584 = vbcast.lane.b32.xlu0 %v582_v19, 256 }
 0x2c9   : > { %577 = vbcast.lane.b32.xlu1 %v563_v17, 280  ;;  %592 = vbcast.lane.b32.xlu0 %v582_v19, 272 }
 0x2cd   : > { %588 = vbcast.lane.b32.xlu1 %v582_v19, 264 }
 0x2d1   : > { %596 = vbcast.lane.b32.xlu1 %v582_v19, 280 }
 0x323   : > { %v532_v20 = vpop.permute.xlu1 %531  ;;  %v528_v21 = vpop.permute.xlu0 %527 }
 0x324   : > { %v599_v22 = vmul.f32 %v532_v20, %v1082_v3  ;;  %v598_v23 = vmul.f32 %v528_v21, %v1074_v1 }
 0x326   : > { %615 = vst [vmem:[%s1176_s27 + $0x8] sm:$0xff] %v599_v22  ;;  %614 = vst [vmem:[%s1176_s27] sm:$0xff] %v598_v23 }
 0x327   : > { %v536_v34 = vpop.permute.xlu1 %535  ;;  %v547_v24 = vpop.permute.xlu0 %546 }
 0x328   : > { %v600_v25 = vmul.f32 %v536_v34, %v1090_v5  ;;  %v602_v3 = vmul.f32 %v547_v24, %v1071_v0 }
 0x32a   : > { %616 = vst [vmem:[%s1176_s27 + $0x10] sm:$0xff] %v600_v25  ;;  %618 = vst [vmem:[%s1176_s27 + $0x20] sm:$0xff] %v602_v3 }
 0x32b   : > { %v540_v1 = vpop.permute.xlu1 %539  ;;  %v555_v26 = vpop.permute.xlu0 %554 }
 0x32c   : > { %v601_v27 = vmul.f32 %v540_v1, %v1106_v9  ;;  %v604_v28 = vmul.f32 %v555_v26, %v1087_v4 }
 0x32e   : > { %617 = vst [vmem:[%s1176_s27 + $0x18] sm:$0xff] %v601_v27  ;;  %620 = vst [vmem:[%s1176_s27 + $0x30] sm:$0xff] %v604_v28 }
 0x32f   : > { %v551_v29 = vpop.permute.xlu1 %550  ;;  %v566_v30 = vpop.permute.xlu0 %565 }
 0x330   : > { %v603_v5 = vmul.f32 %v551_v29, %v1079_v2  ;;  %v606_v0 = vmul.f32 %v566_v30, %v1098_v7 }
 0x332   : > { %619 = vst [vmem:[%s1176_s27 + $0x28] sm:$0xff] %v603_v5  ;;  %622 = vst [vmem:[%s1176_s27 + $0x40] sm:$0xff] %v606_v0 }
 0x333   : > { %v559_v31 = vpop.permute.xlu1 %558  ;;  %v574_v32 = vpop.permute.xlu0 %573 }
 0x334   : > { %v605_v9 = vmul.f32 %v559_v31, %v1103_v8  ;;  %v608_v4 = vmul.f32 %v574_v32, %v1114_v11 }
 0x336   : > { %621 = vst [vmem:[%s1176_s27 + $0x38] sm:$0xff] %v605_v9  ;;  %624 = vst [vmem:[%s1176_s27 + $0x50] sm:$0xff] %v608_v4 }
 0x337   : > { %v570_v33 = vpop.permute.xlu1 %569  ;;  %v585_v35 = vpop.permute.xlu0 %584 }
 0x338   : > { %v607_v2 = vmul.f32 %v570_v33, %v1095_v6  ;;  %v610_v7 = vmul.f32 %v585_v35, %v1111_v10 }
 0x33a   : > { %623 = vst [vmem:[%s1176_s27 + $0x48] sm:$0xff] %v607_v2  ;;  %626 = vst [vmem:[%s1176_s27 + $0x60] sm:$0xff] %v610_v7 }
 0x33b   : > { %v578_v36 = vpop.permute.xlu1 %577  ;;  %v593_v37 = vpop.permute.xlu0 %592 }
 0x33c   : > { %v609_v8 = vmul.f32 %v578_v36, %v1119_v12  ;;  %v612_v11 = vmul.f32 %v593_v37, %v1127_v14 }
 0x33e   : > { %625 = vst [vmem:[%s1176_s27 + $0x58] sm:$0xff] %v609_v8  ;;  %628 = vst [vmem:[%s1176_s27 + $0x70] sm:$0xff] %v612_v11 }
 0x33f   : > { %v589_v38 = vpop.permute.xlu1 %588 }
 0x340   : > { %v611_v40 = vmul.f32 %v589_v38, %v1122_v13 }
 0x342   : > { %627 = vst [vmem:[%s1176_s27 + $0x68] sm:$0xff] %v611_v40 }
 0x343   : > { %v597_v6 = vpop.permute.xlu1 %596 }
 0x344   : > { %v613_v10 = vmul.f32 %v597_v6, %v1130_v15 }
 0x346   : > { %629 = vst [vmem:[%s1176_s27 + $0x78] sm:$0xff] %v613_v10 }
 0x347   : > { %870 = shalt.err (!%p867_p2)
}
 0x348   : > { %s871_s7 = scalar_lea.hbm %s1211_s10, 2048  ;;  %s875_s19 = scalar_lea.hbm %s1262_s3, 4096 }
 0x349   : > { %p872_p4 = scmp.ne.s32.totalorder %s1211_s10, %s871_s7  ;;  %p876_p9 = scmp.lt.u32.totalorder %s1211_s10, %s1262_s3 }
 0x34a   : > { %p877_p1 = scmp.lt.u32.totalorder %s875_s19, %s871_s7  ;;  %p879_p6 = scmp.lt.u32.totalorder %s871_s7, %s1211_s10 }
 0x34b   : > { %p873_p5 = pnand %p872_p4, %p1269_p11 }
 0x34c   : > { %p878_p3 = por %p877_p1, %p876_p9 }
 0x34d   : > { %p874_p7 = pneg %p873_p5 }
 0x34e   : > { %p880_p12 = por %p879_p6, %p878_p3 }
 0x350   : > { %p881_p13 = pnand %p880_p12, %p874_p7 }
 0x352   : > { %884 = shalt.err (!%p881_p13)
}
 0x353   : > { %s932_s26 = smov 128   ;;  %s933_s27 = smov 8  }
 0x354   : > { %772 = dma.vmem_to_hbm [thread:$0]  (%p1269_p11), %s1213_s29, 2048, %s1211_s10, %s631_s11, %s932_s26, %s932_s26, %s933_s27  }
 0x355 PF: > { %s660_s28 = sand.u32 1, %s911_s12   ;;  %p1270_p8 = scmp.ne.s32.totalorder %s1267_s25, 0 }
 0x356   : > { %p1271_p10 = scmp.ge.s32.totalorder %s923_s15, 2  ;;  %s661_s30 = scalar_lea.sflag [#allocation4], %s660_s28 }
 0x358   : > { %p779_p0 = pnand %p1271_p10, %p1270_p8 }
 0x35a   : > { %906 = dma.done.wait (!%p779_p0), %s661_s30, 2048  }
 0x35b   : > { %908 = vsyncadd (!%p779_p0), %s661_s30, 4294965248  ;;  %p16_p2 = scmp.ge.s32.totalorder %s979_s18, 4   ;;  %s1272_s12 = smov %s915_s13 }
 0x35c   : > { %s1273_s13 = smov %s919_s14  ;;  %s1274_s14 = smov %s991_s21 }
 0x35d   : > { %s1275_s15 = smov %s979_s18  ;;  %18 = sbr.rel (!%p16_p2) target bundleno = 5 (0x5), region = 77 }
 0x364   :  { %666 = vsyncpa [#allocation3], 1 }
 0x365   :  { %668 = vsyncpa [#allocation3 + $0x1], 1 }
 0x366   :  { %669 = vsyncpa [#allocation4], 1 }
 0x367   :  { %671 = vsyncpa [#allocation4 + $0x1], 1 }

</bundles_post_ra>
